<compile_context>
chip_gen: v5e
topology: v5e:2x2
jax: 0.10.0
libtpu: 0.0.40
codegen_flags: <defaults>
</compile_context>

<pallas_src>
import jax
import jax.numpy as jnp
from jax.experimental import pallas as pl
from jax.experimental.pallas import tpu as pltpu


def _exp_kernel(x_ref, o_ref):
    # Whole-tile elementwise exp; transcendental issues on the EUP slot.
    o_ref[...] = jnp.exp(x_ref[...]).astype(o_ref.dtype)


def _round_up(a: int, b: int) -> int:
    return pl.cdiv(a, b) * b


def _choose_tile_rows(rows: int, lanes: int, itemsize_in: int, itemsize_out: int) -> int:
    # Sublane packing granularity of the input dtype: 8 (f32), 16 (bf16), 32 (i8).
    sub = 8 * max(1, 4 // itemsize_in)
    max_item = max(itemsize_in, itemsize_out)

    # ~4 MiB for the widest of the two buffers -> <= 16 MiB total with
    # double-buffered input + output.
    target_bytes = 4 << 20
    rows_by_bytes = max(sub, (target_bytes // (lanes * max_item)) // sub * sub)

    rows_padded = _round_up(rows, sub)
    if rows_padded <= rows_by_bytes:
        # Fits in one block.  If it is "medium" sized, split it in two so both
        # v7x TensorCores get a grid step; tiny inputs stay single-block.
        if rows_padded * lanes * max_item > (2 << 20) and rows_padded >= 2 * sub:
            return _round_up(pl.cdiv(rows_padded, 2), sub)
        return rows_padded
    return rows_by_bytes


def exp_pallas(x: jnp.ndarray) -> jnp.ndarray:
    """Compute exp(x) with a Pallas TPU kernel (torch.exp semantics)."""
    orig_shape = x.shape
    n = x.size

    # torch.exp promotes integer/bool tensors to the default float dtype.
    out_dtype = x.dtype if jnp.issubdtype(x.dtype, jnp.floating) else jnp.float32

    if n == 0:
        return jnp.zeros(orig_shape, out_dtype)

    x_flat = jnp.reshape(x, (-1,))

    # Widest lane-dense last dim that divides the flat size exactly -> no copy.
    lanes = None
    for cand in (1024, 512, 256, 128):
        if n % cand == 0:
            lanes = cand
            break

    padded = False
    if lanes is None:
        # Ragged size: a single tiny tail pad to a multiple of 128 lanes.
        lanes = 128
        n_total = _round_up(n, lanes)
        x_flat = jnp.pad(x_flat, (0, n_total - n))
        padded = True
    else:
        n_total = n

    rows = n_total // lanes
    x2d = jnp.reshape(x_flat, (rows, lanes))

    itemsize_in = jnp.dtype(x.dtype).itemsize
    itemsize_out = jnp.dtype(out_dtype).itemsize
    tile_rows = _choose_tile_rows(rows, lanes, itemsize_in, itemsize_out)

    grid = (pl.cdiv(rows, tile_rows),)

    out2d = pl.pallas_call(
        _exp_kernel,
        out_shape=jax.ShapeDtypeStruct((rows, lanes), out_dtype),
        grid_spec=pltpu.PrefetchScalarGridSpec(
            num_scalar_prefetch=0,
            grid=grid,
            in_specs=[pl.BlockSpec((tile_rows, lanes), lambda i: (i, 0))],
            out_specs=pl.BlockSpec((tile_rows, lanes), lambda i: (i, 0)),
        ),
        compiler_params=pltpu.CompilerParams(
            dimension_semantics=("parallel",),
            vmem_limit_bytes=32 * 1024 * 1024,
        ),
    )(x2d)

    if padded:
        out = jnp.reshape(out2d, (-1,))[:n]
        return jnp.reshape(out, orig_shape)
    return jnp.reshape(out2d, orig_shape)


if __name__ == "__main__":
    key = jax.random.PRNGKey(0)

    # Typical NCHW activation: (batch=2, C=4, H=16, W=16) -> 2048 elems,
    # exercises the copy-free wide-lane (1024) fast path.
    x = jax.random.normal(key, (2, 4, 16, 16), dtype=jnp.float32)
    y = exp_pallas(x)
    jax.block_until_ready(y)
    assert y.shape == x.shape and y.dtype == x.dtype
    assert jnp.allclose(y, jnp.exp(x), rtol=1e-6, atol=1e-6)

    # Ragged size (3*5*7 = 105 elems) -> exercises the single-tail-pad path
    # and the masked partial last block.
    x2 = jax.random.normal(jax.random.PRNGKey(1), (3, 5, 7), dtype=jnp.float32)
    y2 = exp_pallas(x2)
    jax.block_until_ready(y2)
    assert y2.shape == x2.shape and y2.dtype == x2.dtype
    assert jnp.allclose(y2, jnp.exp(x2), rtol=1e-6, atol=1e-6)

    # bf16 path: output stays bf16, tile rows align to 16-sublane packing.
    x3 = jax.random.normal(jax.random.PRNGKey(2), (4, 8, 32), dtype=jnp.bfloat16)
    y3 = exp_pallas(x3)
    jax.block_until_ready(y3)
    assert y3.shape == x3.shape and y3.dtype == x3.dtype
    assert jnp.allclose(y3.astype(jnp.float32), jnp.exp(x3).astype(jnp.float32),
                        rtol=2e-2, atol=2e-2)

    print("KERNEL_OK")
</pallas_src>

<mosaic_0001>
module attributes {stable_mosaic.version = 11 : i64} {
  func.func @_exp_kernel(%arg0: i32, %arg1: memref<8x1024xf32, #tpu.memory_space<vmem>>, %arg2: memref<8x1024xf32, #tpu.memory_space<vmem>>) attributes {dimension_semantics = [#tpu.dimension_semantics<parallel>], iteration_bounds = array<i64: 1>, scalar_prefetch = 0 : i64, scratch_operands = 0 : i64, tpu.core_type = #tpu.core_type<tc>, window_params = [{transform_indices = @transform_0, window_bounds = array<i64: 8, 1024>}, {transform_indices = @transform_1, window_bounds = array<i64: 8, 1024>}]} {
    %c0 = arith.constant 0 : index
    %c0_0 = arith.constant 0 : index
    %0 = vector.load %arg1[%c0, %c0_0] : memref<8x1024xf32, #tpu.memory_space<vmem>>, vector<8x1024xf32>
    %1 = math.exp %0 : vector<8x1024xf32>
    %c0_1 = arith.constant 0 : index
    %c0_2 = arith.constant 0 : index
    %2 = vector.load %arg2[%c0_1, %c0_2] : memref<8x1024xf32, #tpu.memory_space<vmem>>, vector<8x1024xf32>
    tpu.vector_store %arg2[%c0_1, %c0_2], %1 {strides = array<i32>} : memref<8x1024xf32, #tpu.memory_space<vmem>>, vector<8x1024xf32>,
    return
  }
  func.func @transform_0(%arg0: i32) -> (i32, i32) {
    %c0_i32 = arith.constant 0 : i32
    %c0_i32_0 = arith.constant 0 : i32
    return %arg0, %c0_i32 : i32, i32
  }
  func.func @transform_1(%arg0: i32) -> (i32, i32) {
    %c0_i32 = arith.constant 0 : i32
    %c0_i32_0 = arith.constant 0 : i32
    return %arg0, %c0_i32 : i32, i32
  }
}

</mosaic_0001>

<bundles_post_ra>
// kernel: tpu_custom_call.1
= control target key start
LH: loop header
LB: loop body
LE: loop exit
PB: predicated region body
PF: predicated region fallthrough
CT: control target
= control target key end

     0   :  { %6 = vsyncpa [#allocation3], 0  ;;  %s174_s0 = inlined_call_operand.hbm [shape: f32[2,1024], index: 0, kind: input, shape index: {}]   ;;  %s175_s1 = inlined_call_operand.hbm [shape: f32[2,1024], index: 1, kind: output, shape index: {}]  }
   0x1   :  { %7 = vsyncpa [#allocation4], 0 }
   0x2   :  { %11 = vsyncadd [#allocation3], 768  ;;  %s12_s8 = sshll.u32 %s174_s0, 4  ;;  %s148_s9 = smov [#allocation2]   ;;  %s13_s8 = int_to_ptr.hbm [resolvable:$true] %s12_s8 }
   0x3   :  { %s14_s10 = sshll.u32 %s148_s9, 4  ;;  %s149_s11 = smov 256   ;;  %s15_s10 = int_to_ptr.vmem [resolvable:$true] %s14_s10 }
   0x4   :  { %s150_s12 = smov 16  }
   0x5   :  { %20 = dma.hbm_to_vmem [thread:$0]  %s13_s8, 256, %s15_s10, [#allocation3], %s149_s11, %s149_s11, %s150_s12  }
   0x6   :  { %144 = dma.done.wait [#allocation3], 1024  }
   0x7   :  { %145 = vsyncadd [#allocation3], 4294966272  ;;  %v25_v0 = vld [vmem:[#allocation2] sm:$0xff]  ;;  %v26_v1 = vld [vmem:[#allocation2 + $0x8] sm:$0xff] }
   0x8   :  { %v27_v2 = vld [vmem:[#allocation2 + $0x10] sm:$0xff]  ;;  %v33_v3 = vmul.f32 1.442695, %v25_v0  ;;  %v35_v4 = vmul.f32 1.442695, %v26_v1  ;;  %v28_v6 = vld [vmem:[#allocation2 + $0x18] sm:$0xff] }
   0x9   :  { %v37_v5 = vmul.f32 1.442695, %v27_v2  ;;  %v29_v7 = vld [vmem:[#allocation2 + $0x20] sm:$0xff]  ;;  %v30_v8 = vld [vmem:[#allocation2 + $0x28] sm:$0xff]  ;;  %v39_v9 = vmul.f32 1.442695, %v28_v6 }
   0xa   :  { %80 = vpow2.f32 %v33_v3  ;;  %v41_v10 = vmul.f32 1.442695, %v29_v7  ;;  %v43_v11 = vmul.f32 1.442695, %v30_v8  ;;  %v31_v12 = vld [vmem:[#allocation2 + $0x30] sm:$0xff]  ;;  %v32_v13 = vld [vmem:[#allocation2 + $0x38] sm:$0xff] }
   0xb   :  { %82 = vpow2.f32 %v35_v4  ;;  %v45_v14 = vmul.f32 1.442695, %v31_v12  ;;  %v47_v15 = vmul.f32 1.442695, %v32_v13 }
   0xc   :  { %84 = vpow2.f32 %v37_v5 }
   0xd   :  { %86 = vpow2.f32 %v39_v9 }
   0xe   :  { %88 = vpow2.f32 %v41_v10 }
   0xf   :  { %90 = vpow2.f32 %v43_v11 }
  0x10   :  { %v81_v16 = vpop.eup %80  ;;  %92 = vpow2.f32 %v45_v14 }
  0x11   :  { %v83_v17 = vpop.eup %82  ;;  %49 = vst [vmem:[#allocation5] sm:$0xff] %v81_v16  ;;  %94 = vpow2.f32 %v47_v15 }
  0x12   :  { %v85_v18 = vpop.eup %84  ;;  %50 = vst [vmem:[#allocation5 + $0x8] sm:$0xff] %v83_v17 }
  0x13   :  { %v87_v19 = vpop.eup %86  ;;  %51 = vst [vmem:[#allocation5 + $0x10] sm:$0xff] %v85_v18 }
  0x14   :  { %v89_v20 = vpop.eup %88  ;;  %52 = vst [vmem:[#allocation5 + $0x18] sm:$0xff] %v87_v19 }
  0x15   :  { %v91_v21 = vpop.eup %90  ;;  %53 = vst [vmem:[#allocation5 + $0x20] sm:$0xff] %v89_v20 }
  0x16   :  { %v93_v22 = vpop.eup %92  ;;  %54 = vst [vmem:[#allocation5 + $0x28] sm:$0xff] %v91_v21 }
  0x17   :  { %v95_v23 = vpop.eup %94  ;;  %55 = vst [vmem:[#allocation5 + $0x30] sm:$0xff] %v93_v22 }
  0x18   :  { %56 = vst [vmem:[#allocation5 + $0x38] sm:$0xff] %v95_v23 }
  0x19   :  { %60 = vsyncadd [#allocation4], 768  ;;  %s63_s14 = sshll.u32 %s175_s1, 4  ;;  %s151_s15 = smov [#allocation5]   ;;  %s64_s14 = int_to_ptr.hbm [resolvable:$true] %s63_s14 }
  0x1a   :  { %s61_s16 = sshll.u32 %s151_s15, 4  ;;  %s62_s16 = int_to_ptr.vmem [resolvable:$true] %s61_s16 }
  0x1b   :  { %69 = dma.vmem_to_hbm [thread:$0]  %s62_s16, 256, %s64_s14, [#allocation4], %s149_s11, %s149_s11, %s150_s12  }
  0x1c   :  { %146 = dma.done.wait [#allocation4], 1024  }
  0x1d   :  { %147 = vsyncadd [#allocation4], 4294966272 }
  0x1e   :  { %74 = vsyncpa [#allocation3], 1 }
  0x1f   :  { %75 = vsyncpa [#allocation4], 1 }

</bundles_post_ra>
